<compile_context>
chip_gen: v7x
topology: tpu7x:2x2x1
jax: 0.10.0
libtpu: 0.0.40
codegen_flags: <defaults>
</compile_context>

<pallas_src>
import jax
import jax.numpy as jnp
from jax.experimental import pallas as pl
from jax.experimental.pallas import tpu as pltpu

IN_DIM = 8
H1 = 400
H2 = 200
OUT_DIM = 2

# Lane-aligned (multiple-of-128) padded feature dims.
H1_PAD = 512
H2_PAD = 256
OUT_PAD = 128


def _cdiv(a, b):
    return -(-a // b)


def _round_up(x, m):
    return ((x + m - 1) // m) * m


_TILING_POLICY = None


def _tiling_policy():
    """Returns (tile_m_max, min_tiles) for the local TPU generation."""
    global _TILING_POLICY
    if _TILING_POLICY is None:
        policy = (1024, 2)  # conservative default: works on v7x (64 MiB VMEM, 2 TCs)
        try:
            kind = jax.devices()[0].device_kind.lower()
            if ("v5" in kind) or ("v6" in kind):
                # 128 MiB VMEM, single TensorCore: prefer one big tile.
                policy = (2048, 1)
        except Exception:
            pass
        _TILING_POLICY = policy
    return _TILING_POLICY


def actor_kernel(s_ref, w1_ref, b1_ref, w2_ref, b2_ref, w3_ref, b3_ref, out_ref):
    # Three MXU matmuls (bf16 inputs, f32 accumulation) + VPU ReLU + EUP tanh.
    # TODO(synk): if bundle profiling shows the MXU slot binding, compute the
    # K=8 first layer as 8 VPU rank-1 updates instead (review item, v7x only).
    x = s_ref[...].astype(jnp.bfloat16)
    h1 = jnp.dot(x, w1_ref[...], preferred_element_type=jnp.float32) + b1_ref[...]
    h1 = jnp.maximum(h1, 0.0)                                   # ReLU
    h2 = jnp.dot(h1.astype(jnp.bfloat16), w2_ref[...],
                 preferred_element_type=jnp.float32) + b2_ref[...]
    h2 = jnp.maximum(h2, 0.0)                                   # ReLU
    a = jnp.dot(h2.astype(jnp.bfloat16), w3_ref[...],
                preferred_element_type=jnp.float32) + b3_ref[...]
    out_ref[...] = jnp.tanh(a)                                  # Tanh (lane-dense store)


def _build_actor_call(tm, b_pad, single_buffer_weights):
    grid = (b_pad // tm,)

    if single_buffer_weights:
        # Constant index_map => weights stay VMEM-resident; one buffer is enough.
        def const_spec(shape):
            return pl.BlockSpec(shape, lambda i: (0, 0),
                                pipeline_mode=pl.Buffered(1))
    else:
        def const_spec(shape):
            return pl.BlockSpec(shape, lambda i: (0, 0))

    # Advisory cost estimate reflecting the padded work actually executed.
    flops = 2 * b_pad * (IN_DIM * H1_PAD + H1_PAD * H2_PAD + H2_PAD * OUT_PAD)
    bytes_accessed = (
        (IN_DIM * H1_PAD + H1_PAD * H2_PAD + H2_PAD * OUT_PAD) * 2   # bf16 weights
        + (H1_PAD + H2_PAD + OUT_PAD) * 4                            # f32 biases
        + b_pad * IN_DIM * 4                                         # state in
        + b_pad * OUT_PAD * 4                                        # padded f32 out
    )

    return pl.pallas_call(
        actor_kernel,
        out_shape=jax.ShapeDtypeStruct((b_pad, OUT_PAD), jnp.float32),
        grid_spec=pltpu.PrefetchScalarGridSpec(
            num_scalar_prefetch=0,
            grid=grid,
            in_specs=[
                pl.BlockSpec((tm, IN_DIM), lambda i: (i, 0)),        # state tile
                const_spec((IN_DIM, H1_PAD)),                        # w1 (resident)
                const_spec((1, H1_PAD)),                             # b1
                const_spec((H1_PAD, H2_PAD)),                        # w2
                const_spec((1, H2_PAD)),                             # b2
                const_spec((H2_PAD, OUT_PAD)),                       # w3
                const_spec((1, OUT_PAD)),                            # b3
            ],
            out_specs=pl.BlockSpec((tm, OUT_PAD), lambda i: (i, 0)),
        ),
        compiler_params=pltpu.CompilerParams(
            dimension_semantics=("parallel",),      # megacore sharding on v7x
        ),
        cost_estimate=pl.CostEstimate(
            flops=flops,
            transcendentals=b_pad * OUT_PAD,        # tanh over 128 padded lanes
            bytes_accessed=bytes_accessed,
        ),
    )


def actor_forward(s, w1, b1, w2, b2, w3, b3):
    """s: (B, IN_DIM) f32. Weights bf16 padded (in_pad, out_pad); biases f32
    (1, out_pad). Returns (B, OUT_DIM) f32 actions in [-1, 1]."""
    B = s.shape[0]
    tile_m_max, min_tiles = _tiling_policy()

    if B <= 8:
        # Latency-bound DDPG acting path: one minimal sublane-aligned tile.
        tm = 8
    else:
        n_tiles = _round_up(max(min_tiles, _cdiv(B, tile_m_max)), min_tiles)
        tm = _round_up(_cdiv(B, n_tiles), 8)        # <= 7 padded rows per tile
    b_pad = _round_up(B, tm)
    if b_pad != B:
        s = jnp.pad(s, ((0, b_pad - B), (0, 0)))

    try:
        out_padded = _build_actor_call(tm, b_pad, True)(s, w1, b1, w2, b2, w3, b3)
    except Exception:
        # Fallback if this JAX build rejects pipeline_mode=pl.Buffered(1).
        out_padded = _build_actor_call(tm, b_pad, False)(s, w1, b1, w2, b2, w3, b3)

    return out_padded[:B, :OUT_DIM]


def init_params(key):
    """nn.Linear-style init U(-1/sqrt(fan_in), 1/sqrt(fan_in)).
    Weights stored as (in_pad, out_pad) bf16 == zero-padded PyTorch weight.T;
    biases as (1, out_pad) f32 zero-padded."""
    ks = jax.random.split(key, 6)

    def linear(kw, kb, fan_in, fan_out, in_pad, out_pad):
        bound = 1.0 / jnp.sqrt(jnp.float32(fan_in))
        w = jax.random.uniform(kw, (fan_in, fan_out), jnp.float32, -bound, bound)
        b = jax.random.uniform(kb, (fan_out,), jnp.float32, -bound, bound)
        w_p = jnp.zeros((in_pad, out_pad), jnp.float32).at[:fan_in, :fan_out].set(w)
        b_p = jnp.zeros((1, out_pad), jnp.float32).at[0, :fan_out].set(b)
        return w_p.astype(jnp.bfloat16), b_p

    w1, b1 = linear(ks[0], ks[1], IN_DIM, H1, IN_DIM, H1_PAD)
    w2, b2 = linear(ks[2], ks[3], H1, H2, H1_PAD, H2_PAD)
    w3, b3 = linear(ks[4], ks[5], H2, OUT_DIM, H2_PAD, OUT_PAD)
    return w1, b1, w2, b2, w3, b3


def actor_ref(s, w1, b1, w2, b2, w3, b3):
    """Pure-JAX reference using the same bf16-input / f32-accumulate math."""
    x = s.astype(jnp.bfloat16)
    h1 = jnp.maximum(jnp.dot(x, w1, preferred_element_type=jnp.float32) + b1, 0.0)
    h2 = jnp.maximum(
        jnp.dot(h1.astype(jnp.bfloat16), w2, preferred_element_type=jnp.float32) + b2, 0.0)
    a = jnp.dot(h2.astype(jnp.bfloat16), w3, preferred_element_type=jnp.float32) + b3
    return jnp.tanh(a)[:, :OUT_DIM]


if __name__ == "__main__":
    key = jax.random.PRNGKey(0)
    k_params, k_s1, k_s2, k_s3 = jax.random.split(key, 4)
    params = init_params(k_params)

    # B=2: per-step DDPG acting path (single tile).
    # B=37: ragged tail padding; >=2 grid steps on 2-TC parts.
    # B=2500: multi-tile grid on every generation (exercises the batch pipeline).
    for batch, ks in ((2, k_s1), (37, k_s2), (2500, k_s3)):
        s = jax.random.normal(ks, (batch, IN_DIM), jnp.float32)
        out = jax.block_until_ready(actor_forward(s, *params))
        ref = actor_ref(s, *params)
        assert out.shape == (batch, OUT_DIM)
        assert jnp.allclose(out, ref, atol=1e-3, rtol=1e-3), "mismatch vs JAX reference"

    print("KERNEL_OK")
</pallas_src>

<mosaic_0001>
module attributes {stable_mosaic.version = 11 : i64} {
  func.func @actor_kernel(%arg0: i32, %arg1: memref<8x8xf32, #tpu.memory_space<vmem>>, %arg2: memref<8x512xbf16, #tpu.memory_space<vmem>>, %arg3: memref<1x512xf32, #tpu.memory_space<vmem>>, %arg4: memref<512x256xbf16, #tpu.memory_space<vmem>>, %arg5: memref<1x256xf32, #tpu.memory_space<vmem>>, %arg6: memref<256x128xbf16, #tpu.memory_space<vmem>>, %arg7: memref<1x128xf32, #tpu.memory_space<vmem>>, %arg8: memref<8x128xf32, #tpu.memory_space<vmem>>) attributes {dimension_semantics = [#tpu.dimension_semantics<parallel>], iteration_bounds = array<i64: 1>, scalar_prefetch = 0 : i64, scratch_operands = 0 : i64, tpu.core_type = #tpu.core_type<tc>, window_params = [{transform_indices = @transform_0, window_bounds = array<i64: 8, 8>}, {pipeline_mode = #tpu.pipeline_mode<synchronous>, transform_indices = @transform_1, window_bounds = array<i64: 8, 512>}, {pipeline_mode = #tpu.pipeline_mode<synchronous>, transform_indices = @transform_2, window_bounds = array<i64: 1, 512>}, {pipeline_mode = #tpu.pipeline_mode<synchronous>, transform_indices = @transform_3, window_bounds = array<i64: 512, 256>}, {pipeline_mode = #tpu.pipeline_mode<synchronous>, transform_indices = @transform_4, window_bounds = array<i64: 1, 256>}, {pipeline_mode = #tpu.pipeline_mode<synchronous>, transform_indices = @transform_5, window_bounds = array<i64: 256, 128>}, {pipeline_mode = #tpu.pipeline_mode<synchronous>, transform_indices = @transform_6, window_bounds = array<i64: 1, 128>}, {transform_indices = @transform_7, window_bounds = array<i64: 8, 128>}]} {
    %c0 = arith.constant 0 : index
    %c0_0 = arith.constant 0 : index
    %0 = vector.load %arg1[%c0, %c0_0] : memref<8x8xf32, #tpu.memory_space<vmem>>, vector<8x8xf32>
    %1 = arith.truncf %0 : vector<8x8xf32> to vector<8x8xbf16>
    %c0_1 = arith.constant 0 : index
    %c0_2 = arith.constant 0 : index
    %2 = vector.load %arg2[%c0_1, %c0_2] : memref<8x512xbf16, #tpu.memory_space<vmem>>, vector<8x512xbf16>
    %cst = arith.constant dense<0.000000e+00> : vector<8x512xf32>
    %3 = tpu.matmul %1, %2, %cst {dimension_numbers = #tpu.dot_dimension_numbers<[1], [0], [0], [1], [0, 0, 1, 1], [], []>} : vector<8x8xbf16>, vector<8x512xbf16>, vector<8x512xf32> -> vector<8x512xf32>
    %c0_3 = arith.constant 0 : index
    %c0_4 = arith.constant 0 : index
    %4 = vector.load %arg3[%c0_3, %c0_4] : memref<1x512xf32, #tpu.memory_space<vmem>>, vector<1x512xf32>
    %5 = vector.broadcast %4 : vector<1x512xf32> to vector<8x512xf32>
    %6 = arith.addf %3, %5 : vector<8x512xf32>
    %cst_5 = arith.constant 0.000000e+00 : f32
    %7 = vector.broadcast %cst_5 : f32 to vector<8x512xf32>
    %8 = arith.maximumf %6, %7 : vector<8x512xf32>
    %9 = arith.truncf %8 : vector<8x512xf32> to vector<8x512xbf16>
    %c0_6 = arith.constant 0 : index
    %c0_7 = arith.constant 0 : index
    %10 = vector.load %arg4[%c0_6, %c0_7] : memref<512x256xbf16, #tpu.memory_space<vmem>>, vector<512x256xbf16>
    %cst_8 = arith.constant dense<0.000000e+00> : vector<8x256xf32>
    %11 = tpu.matmul %9, %10, %cst_8 {dimension_numbers = #tpu.dot_dimension_numbers<[1], [0], [0], [1], [0, 0, 1, 1], [], []>} : vector<8x512xbf16>, vector<512x256xbf16>, vector<8x256xf32> -> vector<8x256xf32>
    %c0_9 = arith.constant 0 : index
    %c0_10 = arith.constant 0 : index
    %12 = vector.load %arg5[%c0_9, %c0_10] : memref<1x256xf32, #tpu.memory_space<vmem>>, vector<1x256xf32>
    %13 = vector.broadcast %12 : vector<1x256xf32> to vector<8x256xf32>
    %14 = arith.addf %11, %13 : vector<8x256xf32>
    %cst_11 = arith.constant 0.000000e+00 : f32
    %15 = vector.broadcast %cst_11 : f32 to vector<8x256xf32>
    %16 = arith.maximumf %14, %15 : vector<8x256xf32>
    %17 = arith.truncf %16 : vector<8x256xf32> to vector<8x256xbf16>
    %c0_12 = arith.constant 0 : index
    %c0_13 = arith.constant 0 : index
    %18 = vector.load %arg6[%c0_12, %c0_13] : memref<256x128xbf16, #tpu.memory_space<vmem>>, vector<256x128xbf16>
    %cst_14 = arith.constant dense<0.000000e+00> : vector<8x128xf32>
    %19 = tpu.matmul %17, %18, %cst_14 {dimension_numbers = #tpu.dot_dimension_numbers<[1], [0], [0], [1], [0, 0, 1, 1], [], []>} : vector<8x256xbf16>, vector<256x128xbf16>, vector<8x128xf32> -> vector<8x128xf32>
    %c0_15 = arith.constant 0 : index
    %c0_16 = arith.constant 0 : index
    %20 = vector.load %arg7[%c0_15, %c0_16] : memref<1x128xf32, #tpu.memory_space<vmem>>, vector<1x128xf32>
    %21 = vector.broadcast %20 : vector<1x128xf32> to vector<8x128xf32>
    %22 = arith.addf %19, %21 : vector<8x128xf32>
    %23 = math.tanh %22 : vector<8x128xf32>
    %c0_17 = arith.constant 0 : index
    %c0_18 = arith.constant 0 : index
    %24 = vector.load %arg8[%c0_17, %c0_18] : memref<8x128xf32, #tpu.memory_space<vmem>>, vector<8x128xf32>
    tpu.vector_store %arg8[%c0_17, %c0_18], %23 {strides = array<i32>} : memref<8x128xf32, #tpu.memory_space<vmem>>, vector<8x128xf32>,
    return
  }
  func.func @transform_0(%arg0: i32) -> (i32, i32) {
    %c0_i32 = arith.constant 0 : i32
    %c0_i32_0 = arith.constant 0 : i32
    return %arg0, %c0_i32 : i32, i32
  }
  func.func @transform_1(%arg0: i32) -> (i32, i32) {
    %c0_i32 = arith.constant 0 : i32
    %c0_i32_0 = arith.constant 0 : i32
    %c0_i32_1 = arith.constant 0 : i32
    return %c0_i32, %c0_i32_0 : i32, i32
  }
  func.func @transform_2(%arg0: i32) -> (i32, i32) {
    %c0_i32 = arith.constant 0 : i32
    %c0_i32_0 = arith.constant 0 : i32
    %c0_i32_1 = arith.constant 0 : i32
    return %c0_i32, %c0_i32_0 : i32, i32
  }
  func.func @transform_3(%arg0: i32) -> (i32, i32) {
    %c0_i32 = arith.constant 0 : i32
    %c0_i32_0 = arith.constant 0 : i32
    %c0_i32_1 = arith.constant 0 : i32
    return %c0_i32, %c0_i32_0 : i32, i32
  }
  func.func @transform_4(%arg0: i32) -> (i32, i32) {
    %c0_i32 = arith.constant 0 : i32
    %c0_i32_0 = arith.constant 0 : i32
    %c0_i32_1 = arith.constant 0 : i32
    return %c0_i32, %c0_i32_0 : i32, i32
  }
  func.func @transform_5(%arg0: i32) -> (i32, i32) {
    %c0_i32 = arith.constant 0 : i32
    %c0_i32_0 = arith.constant 0 : i32
    %c0_i32_1 = arith.constant 0 : i32
    return %c0_i32, %c0_i32_0 : i32, i32
  }
  func.func @transform_6(%arg0: i32) -> (i32, i32) {
    %c0_i32 = arith.constant 0 : i32
    %c0_i32_0 = arith.constant 0 : i32
    %c0_i32_1 = arith.constant 0 : i32
    return %c0_i32, %c0_i32_0 : i32, i32
  }
  func.func @transform_7(%arg0: i32) -> (i32, i32) {
    %c0_i32 = arith.constant 0 : i32
    %c0_i32_0 = arith.constant 0 : i32
    return %arg0, %c0_i32 : i32, i32
  }
}

module attributes {stable_mosaic.version = 11 : i64} {
  func.func @actor_kernel(%arg0: i32, %arg1: memref<8x8xf32, #tpu.memory_space<vmem>>, %arg2: memref<8x512xbf16, #tpu.memory_space<vmem>>, %arg3: memref<1x512xf32, #tpu.memory_space<vmem>>, %arg4: memref<512x256xbf16, #tpu.memory_space<vmem>>, %arg5: memref<1x256xf32, #tpu.memory_space<vmem>>, %arg6: memref<256x128xbf16, #tpu.memory_space<vmem>>, %arg7: memref<1x128xf32, #tpu.memory_space<vmem>>, %arg8: memref<8x128xf32, #tpu.memory_space<vmem>>) attributes {dimension_semantics = [#tpu.dimension_semantics<parallel>], iteration_bounds = array<i64: 1>, scalar_prefetch = 0 : i64, scratch_operands = 0 : i64, tpu.core_type = #tpu.core_type<tc>, window_params = [{transform_indices = @transform_0, window_bounds = array<i64: 8, 8>}, {pipeline_mode = #tpu.pipeline_mode<synchronous>, transform_indices = @transform_1, window_bounds = array<i64: 8, 512>}, {pipeline_mode = #tpu.pipeline_mode<synchronous>, transform_indices = @transform_2, window_bounds = array<i64: 1, 512>}, {pipeline_mode = #tpu.pipeline_mode<synchronous>, transform_indices = @transform_3, window_bounds = array<i64: 512, 256>}, {pipeline_mode = #tpu.pipeline_mode<synchronous>, transform_indices = @transform_4, window_bounds = array<i64: 1, 256>}, {pipeline_mode = #tpu.pipeline_mode<synchronous>, transform_indices = @transform_5, window_bounds = array<i64: 256, 128>}, {pipeline_mode = #tpu.pipeline_mode<synchronous>, transform_indices = @transform_6, window_bounds = array<i64: 1, 128>}, {transform_indices = @transform_7, window_bounds = array<i64: 8, 128>}]} {
    %c0 = arith.constant 0 : index
    %c0_0 = arith.constant 0 : index
    %0 = vector.load %arg1[%c0, %c0_0] : memref<8x8xf32, #tpu.memory_space<vmem>>, vector<8x8xf32>
    %1 = arith.truncf %0 : vector<8x8xf32> to vector<8x8xbf16>
    %c0_1 = arith.constant 0 : index
    %c0_2 = arith.constant 0 : index
    %2 = vector.load %arg2[%c0_1, %c0_2] : memref<8x512xbf16, #tpu.memory_space<vmem>>, vector<8x512xbf16>
    %cst = arith.constant dense<0.000000e+00> : vector<8x512xf32>
    %3 = tpu.matmul %1, %2, %cst {dimension_numbers = #tpu.dot_dimension_numbers<[1], [0], [0], [1], [0, 0, 1, 1], [], []>} : vector<8x8xbf16>, vector<8x512xbf16>, vector<8x512xf32> -> vector<8x512xf32>
    %c0_3 = arith.constant 0 : index
    %c0_4 = arith.constant 0 : index
    %4 = vector.load %arg3[%c0_3, %c0_4] : memref<1x512xf32, #tpu.memory_space<vmem>>, vector<1x512xf32>
    %5 = vector.broadcast %4 : vector<1x512xf32> to vector<8x512xf32>
    %6 = arith.addf %3, %5 : vector<8x512xf32>
    %cst_5 = arith.constant 0.000000e+00 : f32
    %7 = vector.broadcast %cst_5 : f32 to vector<8x512xf32>
    %8 = arith.maximumf %6, %7 : vector<8x512xf32>
    %9 = arith.truncf %8 : vector<8x512xf32> to vector<8x512xbf16>
    %c0_6 = arith.constant 0 : index
    %c0_7 = arith.constant 0 : index
    %10 = vector.load %arg4[%c0_6, %c0_7] : memref<512x256xbf16, #tpu.memory_space<vmem>>, vector<512x256xbf16>
    %cst_8 = arith.constant dense<0.000000e+00> : vector<8x256xf32>
    %11 = tpu.matmul %9, %10, %cst_8 {dimension_numbers = #tpu.dot_dimension_numbers<[1], [0], [0], [1], [0, 0, 1, 1], [], []>} : vector<8x512xbf16>, vector<512x256xbf16>, vector<8x256xf32> -> vector<8x256xf32>
    %c0_9 = arith.constant 0 : index
    %c0_10 = arith.constant 0 : index
    %12 = vector.load %arg5[%c0_9, %c0_10] : memref<1x256xf32, #tpu.memory_space<vmem>>, vector<1x256xf32>
    %13 = vector.broadcast %12 : vector<1x256xf32> to vector<8x256xf32>
    %14 = arith.addf %11, %13 : vector<8x256xf32>
    %cst_11 = arith.constant 0.000000e+00 : f32
    %15 = vector.broadcast %cst_11 : f32 to vector<8x256xf32>
    %16 = arith.maximumf %14, %15 : vector<8x256xf32>
    %17 = arith.truncf %16 : vector<8x256xf32> to vector<8x256xbf16>
    %c0_12 = arith.constant 0 : index
    %c0_13 = arith.constant 0 : index
    %18 = vector.load %arg6[%c0_12, %c0_13] : memref<256x128xbf16, #tpu.memory_space<vmem>>, vector<256x128xbf16>
    %cst_14 = arith.constant dense<0.000000e+00> : vector<8x128xf32>
    %19 = tpu.matmul %17, %18, %cst_14 {dimension_numbers = #tpu.dot_dimension_numbers<[1], [0], [0], [1], [0, 0, 1, 1], [], []>} : vector<8x256xbf16>, vector<256x128xbf16>, vector<8x128xf32> -> vector<8x128xf32>
    %c0_15 = arith.constant 0 : index
    %c0_16 = arith.constant 0 : index
    %20 = vector.load %arg7[%c0_15, %c0_16] : memref<1x128xf32, #tpu.memory_space<vmem>>, vector<1x128xf32>
    %21 = vector.broadcast %20 : vector<1x128xf32> to vector<8x128xf32>
    %22 = arith.addf %19, %21 : vector<8x128xf32>
    %23 = math.tanh %22 : vector<8x128xf32>
    %c0_17 = arith.constant 0 : index
    %c0_18 = arith.constant 0 : index
    %24 = vector.load %arg8[%c0_17, %c0_18] : memref<8x128xf32, #tpu.memory_space<vmem>>, vector<8x128xf32>
    tpu.vector_store %arg8[%c0_17, %c0_18], %23 {strides = array<i32>} : memref<8x128xf32, #tpu.memory_space<vmem>>, vector<8x128xf32>,
    return
  }
  func.func @transform_0(%arg0: i32) -> (i32, i32) {
    %c0_i32 = arith.constant 0 : i32
    %c0_i32_0 = arith.constant 0 : i32
    return %arg0, %c0_i32 : i32, i32
  }
  func.func @transform_1(%arg0: i32) -> (i32, i32) {
    %c0_i32 = arith.constant 0 : i32
    %c0_i32_0 = arith.constant 0 : i32
    %c0_i32_1 = arith.constant 0 : i32
    return %c0_i32, %c0_i32_0 : i32, i32
  }
  func.func @transform_2(%arg0: i32) -> (i32, i32) {
    %c0_i32 = arith.constant 0 : i32
    %c0_i32_0 = arith.constant 0 : i32
    %c0_i32_1 = arith.constant 0 : i32
    return %c0_i32, %c0_i32_0 : i32, i32
  }
  func.func @transform_3(%arg0: i32) -> (i32, i32) {
    %c0_i32 = arith.constant 0 : i32
    %c0_i32_0 = arith.constant 0 : i32
    %c0_i32_1 = arith.constant 0 : i32
    return %c0_i32, %c0_i32_0 : i32, i32
  }
  func.func @transform_4(%arg0: i32) -> (i32, i32) {
    %c0_i32 = arith.constant 0 : i32
    %c0_i32_0 = arith.constant 0 : i32
    %c0_i32_1 = arith.constant 0 : i32
    return %c0_i32, %c0_i32_0 : i32, i32
  }
  func.func @transform_5(%arg0: i32) -> (i32, i32) {
    %c0_i32 = arith.constant 0 : i32
    %c0_i32_0 = arith.constant 0 : i32
    %c0_i32_1 = arith.constant 0 : i32
    return %c0_i32, %c0_i32_0 : i32, i32
  }
  func.func @transform_6(%arg0: i32) -> (i32, i32) {
    %c0_i32 = arith.constant 0 : i32
    %c0_i32_0 = arith.constant 0 : i32
    %c0_i32_1 = arith.constant 0 : i32
    return %c0_i32, %c0_i32_0 : i32, i32
  }
  func.func @transform_7(%arg0: i32) -> (i32, i32) {
    %c0_i32 = arith.constant 0 : i32
    %c0_i32_0 = arith.constant 0 : i32
    return %arg0, %c0_i32 : i32, i32
  }
}

</mosaic_0001>

<bundles_post_ra>
// kernel: tpu_custom_call.1
= control target key start
LH: loop header
LB: loop body
LE: loop exit
PB: predicated region body
PF: predicated region fallthrough
CT: control target
= control target key end

     0   :  { %12 = vsyncpa [#allocation3], 0  ;;  %s1398_s0 = inlined_call_operand.hbm [shape: f32[8,8], index: 0, kind: input, shape index: {}]   ;;  %s1399_s1 = inlined_call_operand.hbm [shape: bf16[8,512], index: 1, kind: input, shape index: {}]   ;;  %s1400_s2 = inlined_call_operand.vmem [shape: f32[1,512], index: 2, kind: input, shape index: {}]   ;;  %s1401_s3 = inlined_call_operand.hbm [shape: bf16[512,256], index: 3, kind: input, shape index: {}]   ;;  %s1402_s4 = inlined_call_operand.vmem [shape: f32[1,256], index: 4, kind: input, shape index: {}]   ;;  %s1403_s5 = inlined_call_operand.hbm [shape: bf16[256,128], index: 5, kind: input, shape index: {}]   ;;  %s1404_s6 = inlined_call_operand.vmem [shape: f32[1,128], index: 6, kind: input, shape index: {}]   ;;  %s1405_s7 = inlined_call_operand.hbm [shape: f32[8,128], index: 7, kind: output, shape index: {}]  }
   0x1   :  { %13 = vsyncpa [#allocation6], 0 }
   0x2   :  { %14 = vsyncpa [#allocation9], 0 }
   0x3   :  { %15 = vsyncpa [#allocation4], 0  ;;  %s1259_s24 = smov [#allocation5]   ;;  %s1260_s26 = smov [#allocation2]  }
   0x4   :  { %s32_s25 = sshll.u32 %s1259_s24, 4  ;;  %s22_s27 = sshll.u32 %s1260_s26, 4  ;;  %s33_s25 = int_to_ptr.vmem [resolvable:$true] %s32_s25  ;;  %s23_s27 = int_to_ptr.vmem [resolvable:$true] %s22_s27 }
   0x5   :  { %s1141_s30 = scalar_lea.hbm %s1399_s1, 256 }
   0x6   :  { %p1142_p0 = scmp.ne.s32.totalorder %s1399_s1, %s1141_s30  ;;  %p1145_p1 = scmp.lt.u32.totalorder %s1141_s30, %s1399_s1 }
   0x8   :  { %p1147_p2 = pnand %p1145_p1, %p1142_p0 }
   0xa   :  { %1150 = shalt.err (!%p1147_p2)
}
   0xb   :  { %s1151_s12 = scalar_lea.vmem %s33_s25, 256  ;;  %p1156_p4 = scmp.lt.s32.totalorder %s33_s25, %s33_s25 }
   0xc   :  { %p1152_p3 = scmp.ne.s32.totalorder %s33_s25, %s1151_s12  ;;  %p1157_p5 = scmp.lt.s32.totalorder %s1151_s12, %s1151_s12 }
   0xe   :  { %p1158_p6 = por %p1157_p5, %p1156_p4 }
  0x10   :  { %p1159_p7 = pnand %p1158_p6, %p1152_p3 }
  0x12   :  { %1162 = shalt.err (!%p1159_p7)
}
  0x13   :  { %35 = dma.hbm_to_vmem [thread:$0]  %s1399_s1, 256, %s33_s25, [#allocation6]  }
  0x14   :  { %s1163_s17 = scalar_lea.hbm %s1398_s0, 128 }
  0x15   :  { %p1164_p8 = scmp.ne.s32.totalorder %s1398_s0, %s1163_s17  ;;  %p1167_p9 = scmp.lt.u32.totalorder %s1163_s17, %s1398_s0 }
  0x17   :  { %p1169_p10 = pnand %p1167_p9, %p1164_p8 }
  0x19   :  { %1172 = shalt.err (!%p1169_p10)
}
  0x1a   :  { %s1173_s22 = scalar_lea.vmem %s23_s27, 128  ;;  %p1178_p12 = scmp.lt.s32.totalorder %s23_s27, %s23_s27 }
  0x1b   :  { %p1174_p11 = scmp.ne.s32.totalorder %s23_s27, %s1173_s22  ;;  %p1179_p13 = scmp.lt.s32.totalorder %s1173_s22, %s1173_s22 }
  0x1d   :  { %p1180_p0 = por %p1179_p13, %p1178_p12 }
  0x1f   :  { %p1181_p1 = pnand %p1180_p0, %p1174_p11 }
  0x21   :  { %1184 = shalt.err (!%p1181_p1)
}
  0x22   :  { %25 = dma.hbm_to_vmem [thread:$0]  %s1398_s0, 128, %s23_s27, [#allocation3]  }
  0x23   :  { %s1261_s24 = smov [#allocation7]   ;;  %s1185_s29 = scalar_lea.hbm %s1401_s3, 8192 }
  0x24   :  { %s43_s25 = sshll.u32 %s1261_s24, 4  ;;  %p1186_p2 = scmp.ne.s32.totalorder %s1401_s3, %s1185_s29  ;;  %s44_s25 = int_to_ptr.vmem [resolvable:$true] %s43_s25 }
  0x25   :  { %p1189_p3 = scmp.lt.u32.totalorder %s1185_s29, %s1401_s3 }
  0x27   :  { %p1191_p4 = pnand %p1189_p3, %p1186_p2 }
  0x29   :  { %1194 = shalt.err (!%p1191_p4)
}
  0x2a   :  { %s1195_s11 = scalar_lea.vmem %s44_s25, 8192  ;;  %p1200_p6 = scmp.lt.s32.totalorder %s44_s25, %s44_s25 }
  0x2b   :  { %p1196_p5 = scmp.ne.s32.totalorder %s44_s25, %s1195_s11  ;;  %p1201_p7 = scmp.lt.s32.totalorder %s1195_s11, %s1195_s11 }
  0x2d   :  { %p1202_p8 = por %p1201_p7, %p1200_p6 }
  0x2f   :  { %p1203_p9 = pnand %p1202_p8, %p1196_p5 }
  0x31   :  { %1206 = shalt.err (!%p1203_p9)
}
  0x32   :  { %s1262_s0 = smov 128   ;;  %s1263_s27 = smov 8  }
  0x33   :  { %49 = dma.hbm_to_vmem [thread:$0]  %s1401_s3, 8192, %s44_s25, [#allocation6], %s1262_s0, %s1262_s0, %s1263_s27  }
  0x34   :  { %s1264_s14 = smov [#allocation8]   ;;  %s1207_s18 = scalar_lea.hbm %s1403_s5, 2048 }
  0x35   :  { %s57_s15 = sshll.u32 %s1264_s14, 4  ;;  %p1208_p10 = scmp.ne.s32.totalorder %s1403_s5, %s1207_s18  ;;  %s58_s15 = int_to_ptr.vmem [resolvable:$true] %s57_s15 }
  0x36   :  { %p1211_p11 = scmp.lt.u32.totalorder %s1207_s18, %s1403_s5 }
  0x38   :  { %p1213_p12 = pnand %p1211_p11, %p1208_p10 }
  0x3a   :  { %1216 = shalt.err (!%p1213_p12)
}
  0x3b   :  { %s1217_s1 = scalar_lea.vmem %s58_s15, 2048  ;;  %p1222_p0 = scmp.lt.s32.totalorder %s58_s15, %s58_s15 }
  0x3c   :  { %p1218_p13 = scmp.ne.s32.totalorder %s58_s15, %s1217_s1  ;;  %p1223_p1 = scmp.lt.s32.totalorder %s1217_s1, %s1217_s1 }
  0x3e   :  { %p1224_p2 = por %p1223_p1, %p1222_p0 }
  0x40   :  { %p1225_p3 = pnand %p1224_p2, %p1218_p13 }
  0x42   :  { %1228 = shalt.err (!%p1225_p3)
}
  0x43   :  { %s1265_s3 = smov 64   ;;  %s1266_s23 = smov 4  }
  0x44   :  { %63 = dma.hbm_to_vmem [thread:$0]  %s1403_s5, 2048, %s58_s15, [#allocation9], %s1265_s3, %s1265_s3, %s1266_s23  }
  0x45   :  { %1251 = dma.done.wait [#allocation3], 128  }
  0x46   :  { %1252 = vsyncadd [#allocation3], 4294967168 }
  0x47   :  { %1253 = dma.done.wait [#allocation6], 8448  }
  0x48   :  { %1254 = vsyncadd [#allocation6], 4294958848 }
  0x49   :  { %1255 = dma.done.wait [#allocation9], 2048  }
  0x4a   :  { %1256 = vsyncadd [#allocation9], 4294965248  ;;  %v1267_v0 = vmov 0   ;;  %v81_v1 = vld [vmem:[#allocation5] sm:$0xff]  ;;  %vm119_vm0 = vcmask 1043456   ;;  %v79_v2 = vld [vmem:[#allocation2] sm:$0xff] }
  0x4b   :  { %164 = vmatprep.mubr.bf16.mxu0 %v1267_v0  ;;  %v82_v3 = vld [vmem:[#allocation5 + $0x8] sm:$0xff]  ;;  %v899_v4 = vcombine.high %v81_v1, %v81_v1  ;;  %v898_v5 = vcombine.low %v81_v1, %v81_v1  ;;  %v1027_v7 = vld [vmem:[#allocation7 + $0x4] ss:$8 sps:$4 sm:$0xff]   ;;  %v1029_v9 = vld [vmem:[#allocation7] ss:$8 sps:$4 sm:$0xff]   ;;  %v80_v11 = vpack.c.bf16 %v79_v2, %v79_v2  ;;  %vm115_vm1 = vcmask 64512  }
  0x4c   :  { %v901_v6 = vcombine.high %v82_v3, %v82_v3  ;;  %v900_v8 = vcombine.low %v82_v3, %v82_v3  ;;  %618 = vmatprep.subr.bf16.mxu1 %v1027_v7  ;;  %v1030_v12 = vld [vmem:[#allocation7 + $0x14] ss:$8 sps:$4 sm:$0xff]   ;;  %v1032_v14 = vld [vmem:[#allocation7 + $0x10] ss:$8 sps:$4 sm:$0xff]   ;;  %v1037_v15 = vld [vmem:[#allocation7 + $0x104] ss:$8 sps:$4 sm:$0xff]  }
  0x4d   :  { %902 = vmatprep.subr.msk.bf16.mxu0 %vm119_vm0, %v899_v4  ;;  %v121_v10 = vsel %vm119_vm0, %v898_v5, 0  ;;  %619 = vmatpush1.bf16.msra.mxu1 %v1029_v9  ;;  %v1033_v16 = vld [vmem:[#allocation7 + $0x24] ss:$8 sps:$4 sm:$0xff]   ;;  %v1038_v17 = vld [vmem:[#allocation7 + $0x20] ss:$8 sps:$4 sm:$0xff]   ;;  %s1268_s30 = smov [#allocation10]  }
  0x4e   :  { %133 = vmatpush1.bf16.msra.mxu0 %v121_v10  ;;  %v127_v13 = vsel %vm119_vm0, %v900_v8, 0  ;;  %620 = vmatprep.subr.bf16.mxu1 %v1030_v12  ;;  %v1039_v18 = vld [vmem:[#allocation7 + $0x34] ss:$8 sps:$4 sm:$0xff]   ;;  %v1035_v19 = vld [vmem:[#allocation7 + $0x100] ss:$8 sps:$4 sm:$0xff]   ;;  %v85_v12 = vlaneseq  ;;  %s887_s8 = sshll.u32 %s1268_s30, 4  ;;  %s888_s8 = int_to_ptr.vmem [resolvable:$true] %s887_s8 }
  0x4f   :  { %904 = vmatprep.subr.msk.bf16.mxu0 %vm119_vm0, %v901_v6  ;;  %v1043_v20 = vld [vmem:[#allocation7 + $0x114] ss:$8 sps:$4 sm:$0xff]   ;;  %v1044_v21 = vld [vmem:[#allocation7 + $0x30] ss:$8 sps:$4 sm:$0xff]   ;;  %v1045_v22 = vld [vmem:[#allocation7 + $0x44] ss:$8 sps:$4 sm:$0xff]   ;;  %p1234_p5 = scmp.lt.s32.totalorder %s888_s8, %s888_s8 }
  0x50   :  { %v1041_v23 = vld [vmem:[#allocation7 + $0x110] ss:$8 sps:$4 sm:$0xff]   ;;  %v1049_v24 = vld [vmem:[#allocation7 + $0x124] ss:$8 sps:$4 sm:$0xff]   ;;  %v1050_v25 = vld [vmem:[#allocation7 + $0x40] ss:$8 sps:$4 sm:$0xff]  }
  0x51   :  { %903 = vmatmul.mubr.msk.bf16.vlgmr.msra.gmra.mrb[0].mxu0 %vm115_vm1, %v80_v11  ;;  %621 = vmatpush1.bf16.msra.mxu1 %v1032_v14  ;;  %v1051_v26 = vld [vmem:[#allocation7 + $0x54] ss:$8 sps:$4 sm:$0xff]   ;;  %v1047_v27 = vld [vmem:[#allocation7 + $0x120] ss:$8 sps:$4 sm:$0xff]   ;;  %v1056_v29 = vld [vmem:[#allocation7 + $0x50] ss:$8 sps:$4 sm:$0xff]  }
  0x52   :  { %174 = vmatpush1.bf16.msra.mxu0 %v127_v13  ;;  %205 = vmatprep.mubr.bf16.mxu0 %v1267_v0  ;;  %v1055_v28 = vld [vmem:[#allocation7 + $0x134] ss:$8 sps:$4 sm:$0xff]   ;;  %v1057_v30 = vld [vmem:[#allocation7 + $0x64] ss:$8 sps:$4 sm:$0xff]   ;;  %v1053_v31 = vld [vmem:[#allocation7 + $0x130] ss:$8 sps:$4 sm:$0xff]  }
  0x53   :  { %659 = vmatprep.subr.bf16.mxu0 %v1037_v15  ;;  %622 = vmatprep.subr.bf16.mxu1 %v1033_v16  ;;  %v1061_v32 = vld [vmem:[#allocation7 + $0x144] ss:$8 sps:$4 sm:$0xff]   ;;  %v1062_v33 = vld [vmem:[#allocation7 + $0x60] ss:$8 sps:$4 sm:$0xff]   ;;  %v1063_v34 = vld [vmem:[#allocation7 + $0x74] ss:$8 sps:$4 sm:$0xff]  }
  0x54   :  { %v1059_v35 = vld [vmem:[#allocation7 + $0x140] ss:$8 sps:$4 sm:$0xff]   ;;  %v1067_v36 = vld [vmem:[#allocation7 + $0x154] ss:$8 sps:$4 sm:$0xff]   ;;  %v1068_v37 = vld [vmem:[#allocation7 + $0x70] ss:$8 sps:$4 sm:$0xff]  }
  0x55   :  { %623 = vmatpush1.bf16.msra.mxu1 %v1038_v17  ;;  %v1069_v38 = vld [vmem:[#allocation7 + $0x84] ss:$8 sps:$4 sm:$0xff]   ;;  %v1065_v39 = vld [vmem:[#allocation7 + $0x150] ss:$8 sps:$4 sm:$0xff]   ;;  %v1074_v41 = vld [vmem:[#allocation7 + $0x80] ss:$8 sps:$4 sm:$0xff]  }
  0x56   :  { %624 = vmatprep.subr.bf16.mxu1 %v1039_v18  ;;  %v1073_v40 = vld [vmem:[#allocation7 + $0x164] ss:$8 sps:$4 sm:$0xff]   ;;  %v1075_v42 = vld [vmem:[#allocation7 + $0x94] ss:$8 sps:$4 sm:$0xff]   ;;  %v1071_v43 = vld [vmem:[#allocation7 + $0x160] ss:$8 sps:$4 sm:$0xff]  }
  0x57   :  { %v1079_v44 = vld [vmem:[#allocation7 + $0x174] ss:$8 sps:$4 sm:$0xff]   ;;  %v1080_v45 = vld [vmem:[#allocation7 + $0x90] ss:$8 sps:$4 sm:$0xff]   ;;  %v1081_v46 = vld [vmem:[#allocation7 + $0xa4] ss:$8 sps:$4 sm:$0xff]  }
  0x58   :  { %v1077_v47 = vld [vmem:[#allocation7 + $0x170] ss:$8 sps:$4 sm:$0xff]   ;;  %v1085_v48 = vld [vmem:[#allocation7 + $0x184] ss:$8 sps:$4 sm:$0xff]   ;;  %v1086_v49 = vld [vmem:[#allocation7 + $0xa0] ss:$8 sps:$4 sm:$0xff]  }
  0x59   :  { %905 = vmatmul.mubr.msk.bf16.vlgmr.msra.gmra.mrb[4].mxu0 %vm115_vm1, %v80_v11  ;;  %625 = vmatpush1.bf16.msra.mxu1 %v1044_v21  ;;  %v1087_v50 = vld [vmem:[#allocation7 + $0xb4] ss:$8 sps:$4 sm:$0xff]   ;;  %v1083_v51 = vld [vmem:[#allocation7 + $0x180] ss:$8 sps:$4 sm:$0xff]   ;;  %v1092_v53 = vld [vmem:[#allocation7 + $0xb0] ss:$8 sps:$4 sm:$0xff]  }
  0x5a   :  { %660 = vmatpush1.bf16.msra.mxu0 %v1035_v19  ;;  %626 = vmatprep.subr.bf16.mxu1 %v1045_v22  ;;  %v1091_v52 = vld [vmem:[#allocation7 + $0x194] ss:$8 sps:$4 sm:$0xff]   ;;  %v1093_v54 = vld [vmem:[#allocation7 + $0xc4] ss:$8 sps:$4 sm:$0xff]   ;;  %v1089_v55 = vld [vmem:[#allocation7 + $0x190] ss:$8 sps:$4 sm:$0xff]  }
  0x5b   :  { %661 = vmatprep.subr.bf16.mxu0 %v1043_v20  ;;  %v1097_v56 = vld [vmem:[#allocation7 + $0x1a4] ss:$8 sps:$4 sm:$0xff]   ;;  %v1098_v57 = vld [vmem:[#allocation7 + $0xc0] ss:$8 sps:$4 sm:$0xff]   ;;  %v1099_v58 = vld [vmem:[#allocation7 + $0xd4] ss:$8 sps:$4 sm:$0xff]  }
  0x5c   :  { %v1095_v59 = vld [vmem:[#allocation7 + $0x1a0] ss:$8 sps:$4 sm:$0xff]   ;;  %v1103_v60 = vld [vmem:[#allocation7 + $0x1b4] ss:$8 sps:$4 sm:$0xff]   ;;  %v1104_v61 = vld [vmem:[#allocation7 + $0xd0] ss:$8 sps:$4 sm:$0xff]  }
  0x5d   :  { %627 = vmatpush1.bf16.msra.mxu1 %v1050_v25  ;;  %v1101_v62 = vld [vmem:[#allocation7 + $0x1b0] ss:$8 sps:$4 sm:$0xff]   ;;  %v1105_v63 = vld [vmem:[#allocation7 + $0xe4] ss:$8 sps:$4 sm:$0xff]   ;;  %v1107_v1 = vld [vmem:[#allocation7 + $0x1c0] ss:$8 sps:$4 sm:$0xff]  }
  0x5e   :  { %662 = vmatpush1.bf16.msra.mxu0 %v1041_v23  ;;  %628 = vmatprep.subr.bf16.mxu1 %v1051_v26  ;;  %v1109_v0 = vld [vmem:[#allocation7 + $0x1c4] ss:$8 sps:$4 sm:$0xff]   ;;  %v1110_v2 = vld [vmem:[#allocation7 + $0xe0] ss:$8 sps:$4 sm:$0xff]   ;;  %v1111_v3 = vld [vmem:[#allocation7 + $0xf4] ss:$8 sps:$4 sm:$0xff]  }
  0x5f   :  { %663 = vmatprep.subr.bf16.mxu0 %v1049_v24  ;;  %v1115_v4 = vld [vmem:[#allocation7 + $0x1d4] ss:$8 sps:$4 sm:$0xff]   ;;  %v1113_v5 = vld [vmem:[#allocation7 + $0x1d0] ss:$8 sps:$4 sm:$0xff]   ;;  %v1119_v7 = vld [vmem:[#allocation7 + $0x1e4] ss:$8 sps:$4 sm:$0xff]  }
  0x60   :  { %v1116_v6 = vld [vmem:[#allocation7 + $0xf0] ss:$8 sps:$4 sm:$0xff]   ;;  %v1117_v8 = vld [vmem:[#allocation7 + $0x1e0] ss:$8 sps:$4 sm:$0xff]   ;;  %v1122_v9 = vld [vmem:[#allocation7 + $0x1f4] ss:$8 sps:$4 sm:$0xff]  }
  0x61   :  { %629 = vmatpush1.bf16.msra.mxu1 %v1056_v29  ;;  %v1120_v10 = vld [vmem:[#allocation7 + $0x1f0] ss:$8 sps:$4 sm:$0xff]   ;;  %v1123_v11 = vld [vmem:[#allocation8 + $0x40] sm:$0xff]   ;;  %v1363_v13 = vshrl.u32 %v85_v12, 7  ;;  %v83_v15 = vld [vmem:[%s1400_s2] sm:$0xf] }
  0x62   :  { %664 = vmatpush1.bf16.msra.mxu0 %v1047_v27  ;;  %630 = vmatprep.subr.bf16.mxu1 %v1057_v30  ;;  %s1229_s9 = scalar_lea.vmem %s888_s8, 128 }
  0x63   :  { %665 = vmatprep.subr.bf16.mxu0 %v1055_v28  ;;  %v87_v14 = vsub.s32 0, %v1363_v13  ;;  %v91_v16 = vsub.s32 1, %v1363_v13  ;;  %v95_v22 = vsub.s32 2, %v1363_v13  ;;  %v99_v25 = vsub.s32 3, %v1363_v13  ;;  %v970_v13 = vld [vmem:[%s1404_s6] ss:$0 sm:$0xff]  ;;  %p1230_p4 = scmp.ne.s32.totalorder %s888_s8, %s1229_s9  ;;  %p1235_p6 = scmp.lt.s32.totalorder %s1229_s9, %s1229_s9 }
  0x65   :  { %631 = vmatpush1.bf16.msra.mxu1 %v1062_v33  ;;  %v88_v17 = vrot.slane %v83_v15, %v87_v14  ;;  %v92_v18 = vrot.slane %v83_v15, %v91_v16  ;;  %v96_v29 = vrot.slane %v83_v15, %v95_v22  ;;  %p1236_p7 = por %p1235_p6, %p1234_p5 }
  0x66   :  { %666 = vmatpush1.bf16.msra.mxu0 %v1053_v31  ;;  %632 = vmatprep.subr.bf16.mxu1 %v1063_v34  ;;  %v100_v31 = vrot.slane %v83_v15, %v99_v25  ;;  %v1125_v34 = vld [vmem:[#allocation8 + $0x48] sm:$0xff]  }
  0x67   :  { %667 = vmatprep.subr.bf16.mxu0 %v1061_v32  ;;  %v1124_v32 = vld [vmem:[#allocation8] sm:$0xff]   ;;  %p1237_p8 = pnand %p1236_p7, %p1230_p4 }
  0x69   :  { %633 = vmatpush1.bf16.msra.mxu1 %v1068_v37 }
  0x6a   :  { %668 = vmatpush1.bf16.msra.mxu0 %v1059_v35  ;;  %634 = vmatprep.subr.bf16.mxu1 %v1069_v38 }
  0x6b   :  { %669 = vmatprep.subr.bf16.mxu0 %v1067_v36 }
  0x6d   :  { %635 = vmatpush1.bf16.msra.mxu1 %v1074_v41 }
  0x6e   :  { %670 = vmatpush1.bf16.msra.mxu0 %v1065_v39  ;;  %636 = vmatprep.subr.bf16.mxu1 %v1075_v42 }
  0x6f   :  { %671 = vmatprep.subr.bf16.mxu0 %v1073_v40  ;;  %v1126_v40 = vld [vmem:[#allocation8 + $0x8] sm:$0xff]  }
  0x71   :  { %637 = vmatpush1.bf16.msra.mxu1 %v1080_v45 }
  0x72   :  { %672 = vmatpush1.bf16.msra.mxu0 %v1071_v43  ;;  %638 = vmatprep.subr.bf16.mxu1 %v1081_v46  ;;  %v1127_v43 = vld [vmem:[#allocation8 + $0x50] sm:$0xff]  }
  0x73   :  { %673 = vmatprep.subr.bf16.mxu0 %v1079_v44  ;;  %v1128_v46 = vld [vmem:[#allocation8 + $0x10] sm:$0xff]  }
  0x75   :  { %639 = vmatpush1.bf16.msra.mxu1 %v1086_v49  ;;  %v1130_v49 = vld [vmem:[#allocation8 + $0x18] sm:$0xff]  }
  0x76   :  { %674 = vmatpush1.bf16.msra.mxu0 %v1077_v47  ;;  %640 = vmatprep.subr.bf16.mxu1 %v1087_v50  ;;  %v1131_v50 = vld [vmem:[#allocation8 + $0x60] sm:$0xff]  }
  0x77   :  { %675 = vmatprep.subr.bf16.mxu0 %v1085_v48  ;;  %v1129_v48 = vld [vmem:[#allocation8 + $0x58] sm:$0xff]  }
  0x79   :  { %641 = vmatpush1.bf16.msra.mxu1 %v1092_v53  ;;  %v1134_v53 = vld [vmem:[#allocation8 + $0x28] sm:$0xff]  }
  0x7a   :  { %676 = vmatpush1.bf16.msra.mxu0 %v1083_v51  ;;  %642 = vmatprep.subr.bf16.mxu1 %v1093_v54  ;;  %v1132_v51 = vld [vmem:[#allocation8 + $0x20] sm:$0xff]   ;;  %v1135_v54 = vld [vmem:[#allocation8 + $0x70] sm:$0xff]  }
  0x7b   :  { %677 = vmatprep.subr.bf16.mxu0 %v1091_v52  ;;  %v1133_v52 = vld [vmem:[#allocation8 + $0x68] sm:$0xff]  }
  0x7d   :  { %643 = vmatpush1.bf16.msra.mxu1 %v1098_v57  ;;  %v1138_v57 = vld [vmem:[#allocation8 + $0x38] sm:$0xff]  }
  0x7e   :  { %678 = vmatpush1.bf16.msra.mxu0 %v1089_v55  ;;  %644 = vmatprep.subr.bf16.mxu1 %v1099_v58  ;;  %v1136_v55 = vld [vmem:[#allocation8 + $0x30] sm:$0xff]   ;;  %v286_v58 = vld [vmem:[%s1402_s4] sm:$0x3] }
  0x7f   :  { %679 = vmatprep.subr.bf16.mxu0 %v1097_v56  ;;  %v1137_v56 = vld [vmem:[#allocation8 + $0x78] sm:$0xff]  }
  0x81   :  { %645 = vmatpush1.bf16.msra.mxu1 %v1104_v61 }
  0x82   :  { %680 = vmatpush1.bf16.msra.mxu0 %v1095_v59  ;;  %646 = vmatprep.subr.bf16.mxu1 %v1105_v63 }
  0x83   :  { %681 = vmatprep.subr.bf16.mxu0 %v1103_v60 }
  0x85   :  { %647 = vmatpush1.bf16.msra.mxu1 %v1110_v2 }
  0x86   :  { %682 = vmatpush1.bf16.msra.mxu0 %v1101_v62  ;;  %648 = vmatprep.subr.bf16.mxu1 %v1111_v3  ;;  %v291_v62 = vrot.slane %v286_v58, %v87_v14 }
  0x87   :  { %683 = vmatprep.subr.bf16.mxu0 %v1109_v0  ;;  %v295_v0 = vrot.slane %v286_v58, %v91_v16 }
  0x89   :  { %649 = vmatpush1.bf16.msra.mxu1 %v1116_v6 }
  0x8a   :  { %684 = vmatpush1.bf16.msra.mxu0 %v1107_v1  ;;  %987 = vmatprep.subr.bf16.mxu1 %v1123_v11 }
  0x8b   :  { %685 = vmatprep.subr.bf16.mxu0 %v1115_v4 }
  0x8e   :  { %686 = vmatpush1.bf16.msra.mxu0 %v1113_v5 }
  0x8f   :  { %687 = vmatprep.subr.bf16.mxu0 %v1119_v7 }
  0x92   :  { %688 = vmatpush1.bf16.msra.mxu0 %v1117_v8 }
  0x93   :  { %689 = vmatprep.subr.bf16.mxu0 %v1122_v9 }
  0x96   :  { %690 = vmatpush1.bf16.msra.mxu0 %v1120_v10 }
 0x124   :  { %v166_v19 = vpop.f32.mrb[0].mxu0 }
 0x125   :  { %v167_v20 = vadd.f32 %v166_v19, %v88_v17  ;;  %v168_v21 = vpop.f32.mrb[1].mxu0 }
 0x126   :  { %v169_v23 = vadd.f32 %v168_v21, %v92_v18  ;;  %v170_v24 = vpop.f32.mrb[2].mxu0 }
 0x127   :  { %v214_v26 = vmax.f32 %v167_v20, 0.0  ;;  %v171_v27 = vpop.f32.mrb[3].mxu0 }
 0x128   :  { %v215_v28 = vmax.f32 %v169_v23, 0.0 }
 0x129   :  { %v218_v33 = vpack.c.bf16 %v214_v26, %v214_v26 }
 0x12a   :  { %v219_v30 = vpack.c.bf16 %v215_v28, %v215_v28 }
 0x12c   :  { %v207_v35 = vpop.f32.mrb[4].mxu0  ;;  %650 = vmatprep.mubr.bf16.mxu1 %v219_v30 }
 0x12d   :  { %v208_v36 = vadd.f32 %v207_v35, %v96_v29  ;;  %v209_v37 = vpop.f32.mrb[5].mxu0  ;;  %651 = vmatmul.mubr.bf16.vlgmr.msra.gmra.mrb[0].mxu1 %v218_v33 }
 0x12e   :  { %v210_v38 = vadd.f32 %v209_v37, %v100_v31  ;;  %v211_v39 = vpop.f32.mrb[6].mxu0  ;;  %988 = vmatpush3.bf16.msra.mxu1 %v1124_v32 }
 0x12f   :  { %v216_v41 = vmax.f32 %v208_v36, 0.0  ;;  %v212_v42 = vpop.f32.mrb[7].mxu0  ;;  %989 = vmatprep.subr.bf16.mxu1 %v1125_v34 }
 0x130   :  { %v217_v44 = vmax.f32 %v210_v38, 0.0 }
 0x131   :  { %v220_v47 = vpack.c.bf16 %v216_v41, %v216_v41 }
 0x132   :  { %v221_v45 = vpack.c.bf16 %v217_v44, %v217_v44  ;;  %990 = vmatpush3.bf16.msra.mxu1 %v1126_v40 }
 0x133   :  { %991 = vmatprep.subr.bf16.mxu1 %v1127_v43 }
 0x134   :  { %691 = vmatprep.mubr.bf16.mxu0 %v221_v45 }
 0x135   :  { %692 = vmatmul.mubr.bf16.vlgmr.msra.gmra.mrb[8].mxu0 %v220_v47 }
 0x136   :  { %992 = vmatpush3.bf16.msra.mxu1 %v1128_v46 }
 0x137   :  { %993 = vmatprep.subr.bf16.mxu1 %v1129_v48 }
 0x13a   :  { %994 = vmatpush3.bf16.msra.mxu1 %v1130_v49 }
 0x13b   :  { %995 = vmatprep.subr.bf16.mxu1 %v1131_v50 }
 0x13e   :  { %996 = vmatpush3.bf16.msra.mxu1 %v1132_v51 }
 0x13f   :  { %997 = vmatprep.subr.bf16.mxu1 %v1133_v52 }
 0x142   :  { %998 = vmatpush3.bf16.msra.mxu1 %v1134_v53 }
 0x143   :  { %999 = vmatprep.subr.bf16.mxu1 %v1135_v54 }
 0x146   :  { %1000 = vmatpush3.bf16.msra.mxu1 %v1136_v55 }
 0x147   :  { %1001 = vmatprep.subr.bf16.mxu1 %v1137_v56 }
 0x14a   :  { %1002 = vmatpush3.bf16.msra.mxu1 %v1138_v57 }
 0x200   :  { %v652_v59 = vpop.f32.mrb[0].mxu1 }
 0x201   :  { %v654_v60 = vpop.f32.mrb[1].mxu1  ;;  %v653_v1 = vadd.f32 %v652_v59, %v291_v62 }
 0x202   :  { %v656_v61 = vpop.f32.mrb[2].mxu1  ;;  %v655_v2 = vadd.f32 %v654_v60, %v295_v0 }
 0x203   :  { %v657_v63 = vpop.f32.mrb[3].mxu1 }
 0x208   :  { %v693_v3 = vpop.f32.mrb[8].mxu0 }
 0x209   :  { %v694_v4 = vadd.f32 %v693_v3, %v653_v1  ;;  %v695_v5 = vpop.f32.mrb[9].mxu0 }
 0x20a   :  { %v696_v6 = vadd.f32 %v695_v5, %v655_v2  ;;  %v697_v7 = vpop.f32.mrb[10].mxu0 }
 0x20b   :  { %v700_v8 = vmax.f32 %v694_v4, 0.0  ;;  %v698_v9 = vpop.f32.mrb[11].mxu0 }
 0x20c   :  { %v701_v10 = vmax.f32 %v696_v6, 0.0 }
 0x20d   :  { %v702_v12 = vpack.c.bf16 %v700_v8, %v700_v8 }
 0x20e   :  { %v703_v11 = vpack.c.bf16 %v701_v10, %v701_v10 }
 0x210   :  { %871 = vmatprep.mubr.bf16.mxu1 %v703_v11 }
 0x211   :  { %872 = vmatmul.mubr.bf16.vlgmr.msra.gmra.mrb[4].mxu1 %v702_v12 }
 0x2e4   :  { %v1003_v15 = vpop.f32.mrb[4].mxu1 }
 0x2e5   :  { %v1004_v14 = vpop.f32.mrb[5].mxu1 }
 0x2e6   :  { %v1005_v16 = vadd.f32 %v1004_v14, %v1003_v15  ;;  %v1006_v17 = vpop.f32.mrb[6].mxu1 }
 0x2e7   :  { %v1007_v18 = vpop.f32.mrb[7].mxu1 }
 0x2e8   :  { %v874_v19 = vadd.f32 %v1005_v16, %v970_v13 }
 0x2ea   :  { %1139 = vtanh.f32 %v874_v19 }
 0x2f4   :  { %v1140_v20 = vpop.eup %1139 }
 0x2f5   :  { %880 = vst [vmem:[#allocation10] sm:$0xff] %v1140_v20 }
 0x2f6   :  { %1240 = shalt.err (!%p1237_p8)
}
 0x2f7   :  { %s1241_s11 = scalar_lea.hbm %s1405_s7, 128 }
 0x2f8   :  { %p1242_p9 = scmp.ne.s32.totalorder %s1405_s7, %s1241_s11  ;;  %p1245_p10 = scmp.lt.u32.totalorder %s1241_s11, %s1405_s7 }
 0x2fa   :  { %p1247_p11 = pnand %p1245_p10, %p1242_p9 }
 0x2fc   :  { %1250 = shalt.err (!%p1247_p11)
}
 0x2fd   :  { %890 = dma.vmem_to_hbm [thread:$0]  %s888_s8, 128, %s1405_s7, [#allocation4]  }
 0x2fe   :  { %1257 = dma.done.wait [#allocation4], 128  }
 0x2ff   :  { %1258 = vsyncadd [#allocation4], 4294967168 }
 0x300   :  { %894 = vsyncpa [#allocation3], 1 }
 0x301   :  { %895 = vsyncpa [#allocation6], 1 }
 0x302   :  { %896 = vsyncpa [#allocation9], 1 }
 0x303   :  { %897 = vsyncpa [#allocation4], 1 }

// kernel: tpu_custom_call.1
= control target key start
LH: loop header
LB: loop body
LE: loop exit
PB: predicated region body
PF: predicated region fallthrough
CT: control target
= control target key end

     0   :  { %12 = vsyncpa [#allocation3], 0  ;;  %s1398_s0 = inlined_call_operand.hbm [shape: f32[8,8], index: 0, kind: input, shape index: {}]   ;;  %s1399_s1 = inlined_call_operand.hbm [shape: bf16[8,512], index: 1, kind: input, shape index: {}]   ;;  %s1400_s2 = inlined_call_operand.vmem [shape: f32[1,512], index: 2, kind: input, shape index: {}]   ;;  %s1401_s3 = inlined_call_operand.hbm [shape: bf16[512,256], index: 3, kind: input, shape index: {}]   ;;  %s1402_s4 = inlined_call_operand.vmem [shape: f32[1,256], index: 4, kind: input, shape index: {}]   ;;  %s1403_s5 = inlined_call_operand.hbm [shape: bf16[256,128], index: 5, kind: input, shape index: {}]   ;;  %s1404_s6 = inlined_call_operand.vmem [shape: f32[1,128], index: 6, kind: input, shape index: {}]   ;;  %s1405_s7 = inlined_call_operand.hbm [shape: f32[8,128], index: 7, kind: output, shape index: {}]  }
   0x1   :  { %13 = vsyncpa [#allocation6], 0 }
   0x2   :  { %14 = vsyncpa [#allocation9], 0 }
   0x3   :  { %15 = vsyncpa [#allocation4], 0  ;;  %s1259_s24 = smov [#allocation5]   ;;  %s1260_s26 = smov [#allocation2]  }
   0x4   :  { %s32_s25 = sshll.u32 %s1259_s24, 4  ;;  %s22_s27 = sshll.u32 %s1260_s26, 4  ;;  %s33_s25 = int_to_ptr.vmem [resolvable:$true] %s32_s25  ;;  %s23_s27 = int_to_ptr.vmem [resolvable:$true] %s22_s27 }
   0x5   :  { %s1141_s30 = scalar_lea.hbm %s1399_s1, 256 }
   0x6   :  { %p1142_p0 = scmp.ne.s32.totalorder %s1399_s1, %s1141_s30  ;;  %p1145_p1 = scmp.lt.u32.totalorder %s1141_s30, %s1399_s1 }
   0x8   :  { %p1147_p2 = pnand %p1145_p1, %p1142_p0 }
   0xa   :  { %1150 = shalt.err (!%p1147_p2)
}
   0xb   :  { %s1151_s12 = scalar_lea.vmem %s33_s25, 256  ;;  %p1156_p4 = scmp.lt.s32.totalorder %s33_s25, %s33_s25 }
   0xc   :  { %p1152_p3 = scmp.ne.s32.totalorder %s33_s25, %s1151_s12  ;;  %p1157_p5 = scmp.lt.s32.totalorder %s1151_s12, %s1151_s12 }
   0xe   :  { %p1158_p6 = por %p1157_p5, %p1156_p4 }
  0x10   :  { %p1159_p7 = pnand %p1158_p6, %p1152_p3 }
  0x12   :  { %1162 = shalt.err (!%p1159_p7)
}
  0x13   :  { %35 = dma.hbm_to_vmem [thread:$0]  %s1399_s1, 256, %s33_s25, [#allocation6]  }
  0x14   :  { %s1163_s17 = scalar_lea.hbm %s1398_s0, 128 }
  0x15   :  { %p1164_p8 = scmp.ne.s32.totalorder %s1398_s0, %s1163_s17  ;;  %p1167_p9 = scmp.lt.u32.totalorder %s1163_s17, %s1398_s0 }
  0x17   :  { %p1169_p10 = pnand %p1167_p9, %p1164_p8 }
  0x19   :  { %1172 = shalt.err (!%p1169_p10)
}
  0x1a   :  { %s1173_s22 = scalar_lea.vmem %s23_s27, 128  ;;  %p1178_p12 = scmp.lt.s32.totalorder %s23_s27, %s23_s27 }
  0x1b   :  { %p1174_p11 = scmp.ne.s32.totalorder %s23_s27, %s1173_s22  ;;  %p1179_p13 = scmp.lt.s32.totalorder %s1173_s22, %s1173_s22 }
  0x1d   :  { %p1180_p0 = por %p1179_p13, %p1178_p12 }
  0x1f   :  { %p1181_p1 = pnand %p1180_p0, %p1174_p11 }
  0x21   :  { %1184 = shalt.err (!%p1181_p1)
}
  0x22   :  { %25 = dma.hbm_to_vmem [thread:$0]  %s1398_s0, 128, %s23_s27, [#allocation3]  }
  0x23   :  { %s1261_s24 = smov [#allocation7]   ;;  %s1185_s29 = scalar_lea.hbm %s1401_s3, 8192 }
  0x24   :  { %s43_s25 = sshll.u32 %s1261_s24, 4  ;;  %p1186_p2 = scmp.ne.s32.totalorder %s1401_s3, %s1185_s29  ;;  %s44_s25 = int_to_ptr.vmem [resolvable:$true] %s43_s25 }
  0x25   :  { %p1189_p3 = scmp.lt.u32.totalorder %s1185_s29, %s1401_s3 }
  0x27   :  { %p1191_p4 = pnand %p1189_p3, %p1186_p2 }
  0x29   :  { %1194 = shalt.err (!%p1191_p4)
}
  0x2a   :  { %s1195_s11 = scalar_lea.vmem %s44_s25, 8192  ;;  %p1200_p6 = scmp.lt.s32.totalorder %s44_s25, %s44_s25 }
  0x2b   :  { %p1196_p5 = scmp.ne.s32.totalorder %s44_s25, %s1195_s11  ;;  %p1201_p7 = scmp.lt.s32.totalorder %s1195_s11, %s1195_s11 }
  0x2d   :  { %p1202_p8 = por %p1201_p7, %p1200_p6 }
  0x2f   :  { %p1203_p9 = pnand %p1202_p8, %p1196_p5 }
  0x31   :  { %1206 = shalt.err (!%p1203_p9)
}
  0x32   :  { %s1262_s0 = smov 128   ;;  %s1263_s27 = smov 8  }
  0x33   :  { %49 = dma.hbm_to_vmem [thread:$0]  %s1401_s3, 8192, %s44_s25, [#allocation6], %s1262_s0, %s1262_s0, %s1263_s27  }
  0x34   :  { %s1264_s14 = smov [#allocation8]   ;;  %s1207_s18 = scalar_lea.hbm %s1403_s5, 2048 }
  0x35   :  { %s57_s15 = sshll.u32 %s1264_s14, 4  ;;  %p1208_p10 = scmp.ne.s32.totalorder %s1403_s5, %s1207_s18  ;;  %s58_s15 = int_to_ptr.vmem [resolvable:$true] %s57_s15 }
  0x36   :  { %p1211_p11 = scmp.lt.u32.totalorder %s1207_s18, %s1403_s5 }
  0x38   :  { %p1213_p12 = pnand %p1211_p11, %p1208_p10 }
  0x3a   :  { %1216 = shalt.err (!%p1213_p12)
}
  0x3b   :  { %s1217_s1 = scalar_lea.vmem %s58_s15, 2048  ;;  %p1222_p0 = scmp.lt.s32.totalorder %s58_s15, %s58_s15 }
  0x3c   :  { %p1218_p13 = scmp.ne.s32.totalorder %s58_s15, %s1217_s1  ;;  %p1223_p1 = scmp.lt.s32.totalorder %s1217_s1, %s1217_s1 }
  0x3e   :  { %p1224_p2 = por %p1223_p1, %p1222_p0 }
  0x40   :  { %p1225_p3 = pnand %p1224_p2, %p1218_p13 }
  0x42   :  { %1228 = shalt.err (!%p1225_p3)
}
  0x43   :  { %s1265_s3 = smov 64   ;;  %s1266_s23 = smov 4  }
  0x44   :  { %63 = dma.hbm_to_vmem [thread:$0]  %s1403_s5, 2048, %s58_s15, [#allocation9], %s1265_s3, %s1265_s3, %s1266_s23  }
  0x45   :  { %1251 = dma.done.wait [#allocation3], 128  }
  0x46   :  { %1252 = vsyncadd [#allocation3], 4294967168 }
  0x47   :  { %1253 = dma.done.wait [#allocation6], 8448  }
  0x48   :  { %1254 = vsyncadd [#allocation6], 4294958848 }
  0x49   :  { %1255 = dma.done.wait [#allocation9], 2048  }
  0x4a   :  { %1256 = vsyncadd [#allocation9], 4294965248  ;;  %v1267_v0 = vmov 0   ;;  %v81_v1 = vld [vmem:[#allocation5] sm:$0xff]  ;;  %vm119_vm0 = vcmask 1043456   ;;  %v79_v2 = vld [vmem:[#allocation2] sm:$0xff] }
  0x4b   :  { %164 = vmatprep.mubr.bf16.mxu0 %v1267_v0  ;;  %v82_v3 = vld [vmem:[#allocation5 + $0x8] sm:$0xff]  ;;  %v899_v4 = vcombine.high %v81_v1, %v81_v1  ;;  %v898_v5 = vcombine.low %v81_v1, %v81_v1  ;;  %v1027_v7 = vld [vmem:[#allocation7 + $0x4] ss:$8 sps:$4 sm:$0xff]   ;;  %v1029_v9 = vld [vmem:[#allocation7] ss:$8 sps:$4 sm:$0xff]   ;;  %v80_v11 = vpack.c.bf16 %v79_v2, %v79_v2  ;;  %vm115_vm1 = vcmask 64512  }
  0x4c   :  { %v901_v6 = vcombine.high %v82_v3, %v82_v3  ;;  %v900_v8 = vcombine.low %v82_v3, %v82_v3  ;;  %618 = vmatprep.subr.bf16.mxu1 %v1027_v7  ;;  %v1030_v12 = vld [vmem:[#allocation7 + $0x14] ss:$8 sps:$4 sm:$0xff]   ;;  %v1032_v14 = vld [vmem:[#allocation7 + $0x10] ss:$8 sps:$4 sm:$0xff]   ;;  %v1037_v15 = vld [vmem:[#allocation7 + $0x104] ss:$8 sps:$4 sm:$0xff]  }
  0x4d   :  { %902 = vmatprep.subr.msk.bf16.mxu0 %vm119_vm0, %v899_v4  ;;  %v121_v10 = vsel %vm119_vm0, %v898_v5, 0  ;;  %619 = vmatpush1.bf16.msra.mxu1 %v1029_v9  ;;  %v1033_v16 = vld [vmem:[#allocation7 + $0x24] ss:$8 sps:$4 sm:$0xff]   ;;  %v1038_v17 = vld [vmem:[#allocation7 + $0x20] ss:$8 sps:$4 sm:$0xff]   ;;  %s1268_s30 = smov [#allocation10]  }
  0x4e   :  { %133 = vmatpush1.bf16.msra.mxu0 %v121_v10  ;;  %v127_v13 = vsel %vm119_vm0, %v900_v8, 0  ;;  %620 = vmatprep.subr.bf16.mxu1 %v1030_v12  ;;  %v1039_v18 = vld [vmem:[#allocation7 + $0x34] ss:$8 sps:$4 sm:$0xff]   ;;  %v1035_v19 = vld [vmem:[#allocation7 + $0x100] ss:$8 sps:$4 sm:$0xff]   ;;  %v85_v12 = vlaneseq  ;;  %s887_s8 = sshll.u32 %s1268_s30, 4  ;;  %s888_s8 = int_to_ptr.vmem [resolvable:$true] %s887_s8 }
  0x4f   :  { %904 = vmatprep.subr.msk.bf16.mxu0 %vm119_vm0, %v901_v6  ;;  %v1043_v20 = vld [vmem:[#allocation7 + $0x114] ss:$8 sps:$4 sm:$0xff]   ;;  %v1044_v21 = vld [vmem:[#allocation7 + $0x30] ss:$8 sps:$4 sm:$0xff]   ;;  %v1045_v22 = vld [vmem:[#allocation7 + $0x44] ss:$8 sps:$4 sm:$0xff]   ;;  %p1234_p5 = scmp.lt.s32.totalorder %s888_s8, %s888_s8 }
  0x50   :  { %v1041_v23 = vld [vmem:[#allocation7 + $0x110] ss:$8 sps:$4 sm:$0xff]   ;;  %v1049_v24 = vld [vmem:[#allocation7 + $0x124] ss:$8 sps:$4 sm:$0xff]   ;;  %v1050_v25 = vld [vmem:[#allocation7 + $0x40] ss:$8 sps:$4 sm:$0xff]  }
  0x51   :  { %903 = vmatmul.mubr.msk.bf16.vlgmr.msra.gmra.mrb[0].mxu0 %vm115_vm1, %v80_v11  ;;  %621 = vmatpush1.bf16.msra.mxu1 %v1032_v14  ;;  %v1051_v26 = vld [vmem:[#allocation7 + $0x54] ss:$8 sps:$4 sm:$0xff]   ;;  %v1047_v27 = vld [vmem:[#allocation7 + $0x120] ss:$8 sps:$4 sm:$0xff]   ;;  %v1056_v29 = vld [vmem:[#allocation7 + $0x50] ss:$8 sps:$4 sm:$0xff]  }
  0x52   :  { %174 = vmatpush1.bf16.msra.mxu0 %v127_v13  ;;  %205 = vmatprep.mubr.bf16.mxu0 %v1267_v0  ;;  %v1055_v28 = vld [vmem:[#allocation7 + $0x134] ss:$8 sps:$4 sm:$0xff]   ;;  %v1057_v30 = vld [vmem:[#allocation7 + $0x64] ss:$8 sps:$4 sm:$0xff]   ;;  %v1053_v31 = vld [vmem:[#allocation7 + $0x130] ss:$8 sps:$4 sm:$0xff]  }
  0x53   :  { %659 = vmatprep.subr.bf16.mxu0 %v1037_v15  ;;  %622 = vmatprep.subr.bf16.mxu1 %v1033_v16  ;;  %v1061_v32 = vld [vmem:[#allocation7 + $0x144] ss:$8 sps:$4 sm:$0xff]   ;;  %v1062_v33 = vld [vmem:[#allocation7 + $0x60] ss:$8 sps:$4 sm:$0xff]   ;;  %v1063_v34 = vld [vmem:[#allocation7 + $0x74] ss:$8 sps:$4 sm:$0xff]  }
  0x54   :  { %v1059_v35 = vld [vmem:[#allocation7 + $0x140] ss:$8 sps:$4 sm:$0xff]   ;;  %v1067_v36 = vld [vmem:[#allocation7 + $0x154] ss:$8 sps:$4 sm:$0xff]   ;;  %v1068_v37 = vld [vmem:[#allocation7 + $0x70] ss:$8 sps:$4 sm:$0xff]  }
  0x55   :  { %623 = vmatpush1.bf16.msra.mxu1 %v1038_v17  ;;  %v1069_v38 = vld [vmem:[#allocation7 + $0x84] ss:$8 sps:$4 sm:$0xff]   ;;  %v1065_v39 = vld [vmem:[#allocation7 + $0x150] ss:$8 sps:$4 sm:$0xff]   ;;  %v1074_v41 = vld [vmem:[#allocation7 + $0x80] ss:$8 sps:$4 sm:$0xff]  }
  0x56   :  { %624 = vmatprep.subr.bf16.mxu1 %v1039_v18  ;;  %v1073_v40 = vld [vmem:[#allocation7 + $0x164] ss:$8 sps:$4 sm:$0xff]   ;;  %v1075_v42 = vld [vmem:[#allocation7 + $0x94] ss:$8 sps:$4 sm:$0xff]   ;;  %v1071_v43 = vld [vmem:[#allocation7 + $0x160] ss:$8 sps:$4 sm:$0xff]  }
  0x57   :  { %v1079_v44 = vld [vmem:[#allocation7 + $0x174] ss:$8 sps:$4 sm:$0xff]   ;;  %v1080_v45 = vld [vmem:[#allocation7 + $0x90] ss:$8 sps:$4 sm:$0xff]   ;;  %v1081_v46 = vld [vmem:[#allocation7 + $0xa4] ss:$8 sps:$4 sm:$0xff]  }
  0x58   :  { %v1077_v47 = vld [vmem:[#allocation7 + $0x170] ss:$8 sps:$4 sm:$0xff]   ;;  %v1085_v48 = vld [vmem:[#allocation7 + $0x184] ss:$8 sps:$4 sm:$0xff]   ;;  %v1086_v49 = vld [vmem:[#allocation7 + $0xa0] ss:$8 sps:$4 sm:$0xff]  }
  0x59   :  { %905 = vmatmul.mubr.msk.bf16.vlgmr.msra.gmra.mrb[4].mxu0 %vm115_vm1, %v80_v11  ;;  %625 = vmatpush1.bf16.msra.mxu1 %v1044_v21  ;;  %v1087_v50 = vld [vmem:[#allocation7 + $0xb4] ss:$8 sps:$4 sm:$0xff]   ;;  %v1083_v51 = vld [vmem:[#allocation7 + $0x180] ss:$8 sps:$4 sm:$0xff]   ;;  %v1092_v53 = vld [vmem:[#allocation7 + $0xb0] ss:$8 sps:$4 sm:$0xff]  }
  0x5a   :  { %660 = vmatpush1.bf16.msra.mxu0 %v1035_v19  ;;  %626 = vmatprep.subr.bf16.mxu1 %v1045_v22  ;;  %v1091_v52 = vld [vmem:[#allocation7 + $0x194] ss:$8 sps:$4 sm:$0xff]   ;;  %v1093_v54 = vld [vmem:[#allocation7 + $0xc4] ss:$8 sps:$4 sm:$0xff]   ;;  %v1089_v55 = vld [vmem:[#allocation7 + $0x190] ss:$8 sps:$4 sm:$0xff]  }
  0x5b   :  { %661 = vmatprep.subr.bf16.mxu0 %v1043_v20  ;;  %v1097_v56 = vld [vmem:[#allocation7 + $0x1a4] ss:$8 sps:$4 sm:$0xff]   ;;  %v1098_v57 = vld [vmem:[#allocation7 + $0xc0] ss:$8 sps:$4 sm:$0xff]   ;;  %v1099_v58 = vld [vmem:[#allocation7 + $0xd4] ss:$8 sps:$4 sm:$0xff]  }
  0x5c   :  { %v1095_v59 = vld [vmem:[#allocation7 + $0x1a0] ss:$8 sps:$4 sm:$0xff]   ;;  %v1103_v60 = vld [vmem:[#allocation7 + $0x1b4] ss:$8 sps:$4 sm:$0xff]   ;;  %v1104_v61 = vld [vmem:[#allocation7 + $0xd0] ss:$8 sps:$4 sm:$0xff]  }
  0x5d   :  { %627 = vmatpush1.bf16.msra.mxu1 %v1050_v25  ;;  %v1101_v62 = vld [vmem:[#allocation7 + $0x1b0] ss:$8 sps:$4 sm:$0xff]   ;;  %v1105_v63 = vld [vmem:[#allocation7 + $0xe4] ss:$8 sps:$4 sm:$0xff]   ;;  %v1107_v1 = vld [vmem:[#allocation7 + $0x1c0] ss:$8 sps:$4 sm:$0xff]  }
  0x5e   :  { %662 = vmatpush1.bf16.msra.mxu0 %v1041_v23  ;;  %628 = vmatprep.subr.bf16.mxu1 %v1051_v26  ;;  %v1109_v0 = vld [vmem:[#allocation7 + $0x1c4] ss:$8 sps:$4 sm:$0xff]   ;;  %v1110_v2 = vld [vmem:[#allocation7 + $0xe0] ss:$8 sps:$4 sm:$0xff]   ;;  %v1111_v3 = vld [vmem:[#allocation7 + $0xf4] ss:$8 sps:$4 sm:$0xff]  }
  0x5f   :  { %663 = vmatprep.subr.bf16.mxu0 %v1049_v24  ;;  %v1115_v4 = vld [vmem:[#allocation7 + $0x1d4] ss:$8 sps:$4 sm:$0xff]   ;;  %v1113_v5 = vld [vmem:[#allocation7 + $0x1d0] ss:$8 sps:$4 sm:$0xff]   ;;  %v1119_v7 = vld [vmem:[#allocation7 + $0x1e4] ss:$8 sps:$4 sm:$0xff]  }
  0x60   :  { %v1116_v6 = vld [vmem:[#allocation7 + $0xf0] ss:$8 sps:$4 sm:$0xff]   ;;  %v1117_v8 = vld [vmem:[#allocation7 + $0x1e0] ss:$8 sps:$4 sm:$0xff]   ;;  %v1122_v9 = vld [vmem:[#allocation7 + $0x1f4] ss:$8 sps:$4 sm:$0xff]  }
  0x61   :  { %629 = vmatpush1.bf16.msra.mxu1 %v1056_v29  ;;  %v1120_v10 = vld [vmem:[#allocation7 + $0x1f0] ss:$8 sps:$4 sm:$0xff]   ;;  %v1123_v11 = vld [vmem:[#allocation8 + $0x40] sm:$0xff]   ;;  %v1363_v13 = vshrl.u32 %v85_v12, 7  ;;  %v83_v15 = vld [vmem:[%s1400_s2] sm:$0xf] }
  0x62   :  { %664 = vmatpush1.bf16.msra.mxu0 %v1047_v27  ;;  %630 = vmatprep.subr.bf16.mxu1 %v1057_v30  ;;  %s1229_s9 = scalar_lea.vmem %s888_s8, 128 }
  0x63   :  { %665 = vmatprep.subr.bf16.mxu0 %v1055_v28  ;;  %v87_v14 = vsub.s32 0, %v1363_v13  ;;  %v91_v16 = vsub.s32 1, %v1363_v13  ;;  %v95_v22 = vsub.s32 2, %v1363_v13  ;;  %v99_v25 = vsub.s32 3, %v1363_v13  ;;  %v970_v13 = vld [vmem:[%s1404_s6] ss:$0 sm:$0xff]  ;;  %p1230_p4 = scmp.ne.s32.totalorder %s888_s8, %s1229_s9  ;;  %p1235_p6 = scmp.lt.s32.totalorder %s1229_s9, %s1229_s9 }
  0x65   :  { %631 = vmatpush1.bf16.msra.mxu1 %v1062_v33  ;;  %v88_v17 = vrot.slane %v83_v15, %v87_v14  ;;  %v92_v18 = vrot.slane %v83_v15, %v91_v16  ;;  %v96_v29 = vrot.slane %v83_v15, %v95_v22  ;;  %p1236_p7 = por %p1235_p6, %p1234_p5 }
  0x66   :  { %666 = vmatpush1.bf16.msra.mxu0 %v1053_v31  ;;  %632 = vmatprep.subr.bf16.mxu1 %v1063_v34  ;;  %v100_v31 = vrot.slane %v83_v15, %v99_v25  ;;  %v1125_v34 = vld [vmem:[#allocation8 + $0x48] sm:$0xff]  }
  0x67   :  { %667 = vmatprep.subr.bf16.mxu0 %v1061_v32  ;;  %v1124_v32 = vld [vmem:[#allocation8] sm:$0xff]   ;;  %p1237_p8 = pnand %p1236_p7, %p1230_p4 }
  0x69   :  { %633 = vmatpush1.bf16.msra.mxu1 %v1068_v37 }
  0x6a   :  { %668 = vmatpush1.bf16.msra.mxu0 %v1059_v35  ;;  %634 = vmatprep.subr.bf16.mxu1 %v1069_v38 }
  0x6b   :  { %669 = vmatprep.subr.bf16.mxu0 %v1067_v36 }
  0x6d   :  { %635 = vmatpush1.bf16.msra.mxu1 %v1074_v41 }
  0x6e   :  { %670 = vmatpush1.bf16.msra.mxu0 %v1065_v39  ;;  %636 = vmatprep.subr.bf16.mxu1 %v1075_v42 }
  0x6f   :  { %671 = vmatprep.subr.bf16.mxu0 %v1073_v40  ;;  %v1126_v40 = vld [vmem:[#allocation8 + $0x8] sm:$0xff]  }
  0x71   :  { %637 = vmatpush1.bf16.msra.mxu1 %v1080_v45 }
  0x72   :  { %672 = vmatpush1.bf16.msra.mxu0 %v1071_v43  ;;  %638 = vmatprep.subr.bf16.mxu1 %v1081_v46  ;;  %v1127_v43 = vld [vmem:[#allocation8 + $0x50] sm:$0xff]  }
  0x73   :  { %673 = vmatprep.subr.bf16.mxu0 %v1079_v44  ;;  %v1128_v46 = vld [vmem:[#allocation8 + $0x10] sm:$0xff]  }
  0x75   :  { %639 = vmatpush1.bf16.msra.mxu1 %v1086_v49  ;;  %v1130_v49 = vld [vmem:[#allocation8 + $0x18] sm:$0xff]  }
  0x76   :  { %674 = vmatpush1.bf16.msra.mxu0 %v1077_v47  ;;  %640 = vmatprep.subr.bf16.mxu1 %v1087_v50  ;;  %v1131_v50 = vld [vmem:[#allocation8 + $0x60] sm:$0xff]  }
  0x77   :  { %675 = vmatprep.subr.bf16.mxu0 %v1085_v48  ;;  %v1129_v48 = vld [vmem:[#allocation8 + $0x58] sm:$0xff]  }
  0x79   :  { %641 = vmatpush1.bf16.msra.mxu1 %v1092_v53  ;;  %v1134_v53 = vld [vmem:[#allocation8 + $0x28] sm:$0xff]  }
  0x7a   :  { %676 = vmatpush1.bf16.msra.mxu0 %v1083_v51  ;;  %642 = vmatprep.subr.bf16.mxu1 %v1093_v54  ;;  %v1132_v51 = vld [vmem:[#allocation8 + $0x20] sm:$0xff]   ;;  %v1135_v54 = vld [vmem:[#allocation8 + $0x70] sm:$0xff]  }
  0x7b   :  { %677 = vmatprep.subr.bf16.mxu0 %v1091_v52  ;;  %v1133_v52 = vld [vmem:[#allocation8 + $0x68] sm:$0xff]  }
  0x7d   :  { %643 = vmatpush1.bf16.msra.mxu1 %v1098_v57  ;;  %v1138_v57 = vld [vmem:[#allocation8 + $0x38] sm:$0xff]  }
  0x7e   :  { %678 = vmatpush1.bf16.msra.mxu0 %v1089_v55  ;;  %644 = vmatprep.subr.bf16.mxu1 %v1099_v58  ;;  %v1136_v55 = vld [vmem:[#allocation8 + $0x30] sm:$0xff]   ;;  %v286_v58 = vld [vmem:[%s1402_s4] sm:$0x3] }
  0x7f   :  { %679 = vmatprep.subr.bf16.mxu0 %v1097_v56  ;;  %v1137_v56 = vld [vmem:[#allocation8 + $0x78] sm:$0xff]  }
  0x81   :  { %645 = vmatpush1.bf16.msra.mxu1 %v1104_v61 }
  0x82   :  { %680 = vmatpush1.bf16.msra.mxu0 %v1095_v59  ;;  %646 = vmatprep.subr.bf16.mxu1 %v1105_v63 }
  0x83   :  { %681 = vmatprep.subr.bf16.mxu0 %v1103_v60 }
  0x85   :  { %647 = vmatpush1.bf16.msra.mxu1 %v1110_v2 }
  0x86   :  { %682 = vmatpush1.bf16.msra.mxu0 %v1101_v62  ;;  %648 = vmatprep.subr.bf16.mxu1 %v1111_v3  ;;  %v291_v62 = vrot.slane %v286_v58, %v87_v14 }
  0x87   :  { %683 = vmatprep.subr.bf16.mxu0 %v1109_v0  ;;  %v295_v0 = vrot.slane %v286_v58, %v91_v16 }
  0x89   :  { %649 = vmatpush1.bf16.msra.mxu1 %v1116_v6 }
  0x8a   :  { %684 = vmatpush1.bf16.msra.mxu0 %v1107_v1  ;;  %987 = vmatprep.subr.bf16.mxu1 %v1123_v11 }
  0x8b   :  { %685 = vmatprep.subr.bf16.mxu0 %v1115_v4 }
  0x8e   :  { %686 = vmatpush1.bf16.msra.mxu0 %v1113_v5 }
  0x8f   :  { %687 = vmatprep.subr.bf16.mxu0 %v1119_v7 }
  0x92   :  { %688 = vmatpush1.bf16.msra.mxu0 %v1117_v8 }
  0x93   :  { %689 = vmatprep.subr.bf16.mxu0 %v1122_v9 }
  0x96   :  { %690 = vmatpush1.bf16.msra.mxu0 %v1120_v10 }
 0x124   :  { %v166_v19 = vpop.f32.mrb[0].mxu0 }
 0x125   :  { %v167_v20 = vadd.f32 %v166_v19, %v88_v17  ;;  %v168_v21 = vpop.f32.mrb[1].mxu0 }
 0x126   :  { %v169_v23 = vadd.f32 %v168_v21, %v92_v18  ;;  %v170_v24 = vpop.f32.mrb[2].mxu0 }
 0x127   :  { %v214_v26 = vmax.f32 %v167_v20, 0.0  ;;  %v171_v27 = vpop.f32.mrb[3].mxu0 }
 0x128   :  { %v215_v28 = vmax.f32 %v169_v23, 0.0 }
 0x129   :  { %v218_v33 = vpack.c.bf16 %v214_v26, %v214_v26 }
 0x12a   :  { %v219_v30 = vpack.c.bf16 %v215_v28, %v215_v28 }
 0x12c   :  { %v207_v35 = vpop.f32.mrb[4].mxu0  ;;  %650 = vmatprep.mubr.bf16.mxu1 %v219_v30 }
 0x12d   :  { %v208_v36 = vadd.f32 %v207_v35, %v96_v29  ;;  %v209_v37 = vpop.f32.mrb[5].mxu0  ;;  %651 = vmatmul.mubr.bf16.vlgmr.msra.gmra.mrb[0].mxu1 %v218_v33 }
 0x12e   :  { %v210_v38 = vadd.f32 %v209_v37, %v100_v31  ;;  %v211_v39 = vpop.f32.mrb[6].mxu0  ;;  %988 = vmatpush3.bf16.msra.mxu1 %v1124_v32 }
 0x12f   :  { %v216_v41 = vmax.f32 %v208_v36, 0.0  ;;  %v212_v42 = vpop.f32.mrb[7].mxu0  ;;  %989 = vmatprep.subr.bf16.mxu1 %v1125_v34 }
 0x130   :  { %v217_v44 = vmax.f32 %v210_v38, 0.0 }
 0x131   :  { %v220_v47 = vpack.c.bf16 %v216_v41, %v216_v41 }
 0x132   :  { %v221_v45 = vpack.c.bf16 %v217_v44, %v217_v44  ;;  %990 = vmatpush3.bf16.msra.mxu1 %v1126_v40 }
 0x133   :  { %991 = vmatprep.subr.bf16.mxu1 %v1127_v43 }
 0x134   :  { %691 = vmatprep.mubr.bf16.mxu0 %v221_v45 }
 0x135   :  { %692 = vmatmul.mubr.bf16.vlgmr.msra.gmra.mrb[8].mxu0 %v220_v47 }
 0x136   :  { %992 = vmatpush3.bf16.msra.mxu1 %v1128_v46 }
 0x137   :  { %993 = vmatprep.subr.bf16.mxu1 %v1129_v48 }
 0x13a   :  { %994 = vmatpush3.bf16.msra.mxu1 %v1130_v49 }
 0x13b   :  { %995 = vmatprep.subr.bf16.mxu1 %v1131_v50 }
 0x13e   :  { %996 = vmatpush3.bf16.msra.mxu1 %v1132_v51 }
 0x13f   :  { %997 = vmatprep.subr.bf16.mxu1 %v1133_v52 }
 0x142   :  { %998 = vmatpush3.bf16.msra.mxu1 %v1134_v53 }
 0x143   :  { %999 = vmatprep.subr.bf16.mxu1 %v1135_v54 }
 0x146   :  { %1000 = vmatpush3.bf16.msra.mxu1 %v1136_v55 }
 0x147   :  { %1001 = vmatprep.subr.bf16.mxu1 %v1137_v56 }
 0x14a   :  { %1002 = vmatpush3.bf16.msra.mxu1 %v1138_v57 }
 0x200   :  { %v652_v59 = vpop.f32.mrb[0].mxu1 }
 0x201   :  { %v654_v60 = vpop.f32.mrb[1].mxu1  ;;  %v653_v1 = vadd.f32 %v652_v59, %v291_v62 }
 0x202   :  { %v656_v61 = vpop.f32.mrb[2].mxu1  ;;  %v655_v2 = vadd.f32 %v654_v60, %v295_v0 }
 0x203   :  { %v657_v63 = vpop.f32.mrb[3].mxu1 }
 0x208   :  { %v693_v3 = vpop.f32.mrb[8].mxu0 }
 0x209   :  { %v694_v4 = vadd.f32 %v693_v3, %v653_v1  ;;  %v695_v5 = vpop.f32.mrb[9].mxu0 }
 0x20a   :  { %v696_v6 = vadd.f32 %v695_v5, %v655_v2  ;;  %v697_v7 = vpop.f32.mrb[10].mxu0 }
 0x20b   :  { %v700_v8 = vmax.f32 %v694_v4, 0.0  ;;  %v698_v9 = vpop.f32.mrb[11].mxu0 }
 0x20c   :  { %v701_v10 = vmax.f32 %v696_v6, 0.0 }
 0x20d   :  { %v702_v12 = vpack.c.bf16 %v700_v8, %v700_v8 }
 0x20e   :  { %v703_v11 = vpack.c.bf16 %v701_v10, %v701_v10 }
 0x210   :  { %871 = vmatprep.mubr.bf16.mxu1 %v703_v11 }
 0x211   :  { %872 = vmatmul.mubr.bf16.vlgmr.msra.gmra.mrb[4].mxu1 %v702_v12 }
 0x2e4   :  { %v1003_v15 = vpop.f32.mrb[4].mxu1 }
 0x2e5   :  { %v1004_v14 = vpop.f32.mrb[5].mxu1 }
 0x2e6   :  { %v1005_v16 = vadd.f32 %v1004_v14, %v1003_v15  ;;  %v1006_v17 = vpop.f32.mrb[6].mxu1 }
 0x2e7   :  { %v1007_v18 = vpop.f32.mrb[7].mxu1 }
 0x2e8   :  { %v874_v19 = vadd.f32 %v1005_v16, %v970_v13 }
 0x2ea   :  { %1139 = vtanh.f32 %v874_v19 }
 0x2f4   :  { %v1140_v20 = vpop.eup %1139 }
 0x2f5   :  { %880 = vst [vmem:[#allocation10] sm:$0xff] %v1140_v20 }
 0x2f6   :  { %1240 = shalt.err (!%p1237_p8)
}
 0x2f7   :  { %s1241_s11 = scalar_lea.hbm %s1405_s7, 128 }
 0x2f8   :  { %p1242_p9 = scmp.ne.s32.totalorder %s1405_s7, %s1241_s11  ;;  %p1245_p10 = scmp.lt.u32.totalorder %s1241_s11, %s1405_s7 }
 0x2fa   :  { %p1247_p11 = pnand %p1245_p10, %p1242_p9 }
 0x2fc   :  { %1250 = shalt.err (!%p1247_p11)
}
 0x2fd   :  { %890 = dma.vmem_to_hbm [thread:$0]  %s888_s8, 128, %s1405_s7, [#allocation4]  }
 0x2fe   :  { %1257 = dma.done.wait [#allocation4], 128  }
 0x2ff   :  { %1258 = vsyncadd [#allocation4], 4294967168 }
 0x300   :  { %894 = vsyncpa [#allocation3], 1 }
 0x301   :  { %895 = vsyncpa [#allocation6], 1 }
 0x302   :  { %896 = vsyncpa [#allocation9], 1 }
 0x303   :  { %897 = vsyncpa [#allocation4], 1 }

</bundles_post_ra>
